<compile_context>
chip_gen: v7x
topology: tpu7x:2x2x1
jax: 0.10.0
libtpu: 0.0.40
codegen_flags: <defaults>
</compile_context>

<pallas_src>
import numpy as np
import jax
import jax.numpy as jnp
from jax.experimental import pallas as pl
from jax.experimental.pallas import tpu as pltpu

EPS = 1e-8   # TODO(synk): reduce_masked_mean's epsilon is not shown in the reference; 1e-8 assumed.
LANE = 128
SUB = 8
CHUNK_BCE = SUB          # rows per grid step on the (B*S*N)-flattened streams
CHUNK_SEQ = 2 * SUB      # rows per grid step on the D-interleaved (B*S*N*2) streams


def _cdiv(a, b):
    return (a + b - 1) // b


# ----------------------------- fused Pallas kernel ------------------------------ #

def _make_chunk_kernel(I, gamma):
    """Per 8-row chunk of the ragged-packed streams, emit 6 partial sums:
       lane0: sum_i [gamma^(I-1-i)/(2I)] * |pred_i - gt| * valid2     (seq numerator)
       lane1: sum(valid)                                              (seq denominator)
       lane2/3: sum(bce*pos*valid), sum(pos*valid)
       lane4/5: sum(bce*neg*valid), sum(neg*valid)
    All divisions / per-window 1/N scaling happen outside the kernel."""
    # gamma^(I-1-i), with mean-over-D (0.5) and 1/n_predictions folded in at trace time.
    w_i = [float(gamma ** (I - 1 - i)) * 0.5 / I for i in range(I)]

    def kernel(coord_ref, gt_ref, v2_ref, vp_ref, vg_ref, val_ref, out_ref):
        gt = gt_ref[...]                       # (CHUNK_SEQ, 128)
        v2 = v2_ref[...]                       # D-broadcast valid mask, zero in padding

        # Vector accumulator over refinement iterations; single reduction after the loop.
        acc = w_i[0] * jnp.abs(coord_ref[0] - gt)
        for i in range(1, I):
            acc = acc + w_i[i] * jnp.abs(coord_ref[i] - gt)
        num_seq = jnp.sum(acc * v2)

        vp = vp_ref[...]                       # (CHUNK_BCE, 128)
        vg = vg_ref[...]
        val = val_ref[...]                     # zero in padded lanes
        den_seq = jnp.sum(val)                 # == sum(valid) over this chunk

        pos = (vg > 0.95).astype(jnp.float32)
        neg = (vg < 0.05).astype(jnp.float32)
        label = pos * 2.0 - 1.0
        a = -label * vp
        # == relu(a) + log(exp(-relu(a)) + exp(a-relu(a))), one exp + one log.
        loss = jnp.maximum(a, 0.0) + jnp.log(1.0 + jnp.exp(-jnp.abs(a)))
        pm = pos * val
        nm = neg * val
        num_pos = jnp.sum(loss * pm)
        den_pos = jnp.sum(pm)
        num_neg = jnp.sum(loss * nm)
        den_neg = jnp.sum(nm)

        lane = jax.lax.broadcasted_iota(jnp.int32, (SUB, LANE), 1)
        out_ref[...] = (jnp.where(lane == 0, num_seq, 0.0)
                        + jnp.where(lane == 1, den_seq, 0.0)
                        + jnp.where(lane == 2, num_pos, 0.0)
                        + jnp.where(lane == 3, den_pos, 0.0)
                        + jnp.where(lane == 4, num_neg, 0.0)
                        + jnp.where(lane == 5, den_neg, 0.0))

    return kernel


# --------------------------- fused loss wrapper -------------------------------- #

def fused_cotracker_losses(coord_predictions, vis_predictions,
                           traj_gts, vis_gts, valids_gts, gamma=0.8):
    """One gridded pallas_call over 8-row chunks of the ragged-packed windows.
    Returns (seq_loss, bce_loss_unscaled)."""
    W = len(traj_gts)
    I = len(coord_predictions[0])
    assert all(len(c) == I for c in coord_predictions)
    B, S, _, D = traj_gts[0].shape
    assert D == 2
    wind = [int(t.shape[2]) for t in traj_gts]
    f32 = jnp.float32

    # Per-window ragged packing: each window padded to its OWN multiple of 8x128
    # (no padding to the max window), windows concatenated along the sublane axis.
    Ls = [B * S * n for n in wind]
    R1s = [SUB * _cdiv(L, SUB * LANE) for L in Ls]         # rows on the (B,S,N) streams
    P1s = [r * LANE for r in R1s]                          # padded flat length per window
    P2s = [2 * p for p in P1s]                             # padded length on D-interleaved streams
    Rtot1 = sum(R1s)
    Rtot2 = 2 * Rtot1
    n_chunks = Rtot1 // CHUNK_BCE

    def pack(pieces, plens):
        # one concatenate of zero-padded flat pieces -> (rows, 128); single HBM pass
        segs = [jnp.pad(p.astype(f32).reshape(-1), (0, q - p.size))
                for p, q in zip(pieces, plens)]
        return jnp.concatenate(segs).reshape(-1, LANE)

    # coord: i-major then window-major so a single concat directly yields the row-major
    # (I, Rtot2, 128) layout -- no transpose, D stays lane-interleaved.
    coord_all = pack([coord_predictions[w][i] for i in range(I) for w in range(W)],
                     [P2s[w] for _ in range(I) for w in range(W)]).reshape(I, Rtot2, LANE)
    gt_all = pack(traj_gts, P2s)                                            # (Rtot2, 128)
    v2_all = pack([jnp.broadcast_to(v[..., None], v.shape + (2,))
                   for v in valids_gts], P2s)                               # D-broadcast mask
    vp_all = pack(vis_predictions, P1s)                                     # (Rtot1, 128)
    vg_all = pack(vis_gts, P1s)
    val_all = pack(valids_gts, P1s)

    kernel = _make_chunk_kernel(I, gamma)
    out = pl.pallas_call(
        kernel,
        out_shape=jax.ShapeDtypeStruct((n_chunks, SUB, LANE), f32),
        grid=(n_chunks,),
        in_specs=[
            pl.BlockSpec((I, CHUNK_SEQ, LANE), lambda c: (0, c, 0)),
            pl.BlockSpec((CHUNK_SEQ, LANE), lambda c: (c, 0)),
            pl.BlockSpec((CHUNK_SEQ, LANE), lambda c: (c, 0)),
            pl.BlockSpec((CHUNK_BCE, LANE), lambda c: (c, 0)),
            pl.BlockSpec((CHUNK_BCE, LANE), lambda c: (c, 0)),
            pl.BlockSpec((CHUNK_BCE, LANE), lambda c: (c, 0)),
        ],
        out_specs=pl.BlockSpec((None, SUB, LANE), lambda c: (c, 0, 0)),
        compiler_params=pltpu.CompilerParams(
            dimension_semantics=("parallel",)),     # chunks shard across v7x's two TCs
    )(coord_all, gt_all, v2_all, vp_all, vg_all, val_all)

    # Tiny finalization outside the kernel: per-window segment sums (static slices, chunks
    # never straddle windows), exact divides for the (denom + EPS) terms, 1/N as a multiply.
    parts = out[:, 0, :]                                    # (n_chunks, 128)
    chunk_starts = np.cumsum([0] + [r // CHUNK_BCE for r in R1s])
    per_win = jnp.stack(
        [jnp.sum(parts[int(chunk_starts[w]):int(chunk_starts[w + 1])], axis=0)
         for w in range(W)])                                # (W, 128)
    inv_n = jnp.asarray([1.0 / n for n in wind], f32)
    seq_loss = jnp.sum(per_win[:, 0] / (per_win[:, 1] + EPS) * inv_n)
    bce_loss = jnp.sum((per_win[:, 2] / (per_win[:, 3] + EPS)
                        + per_win[:, 4] / (per_win[:, 5] + EPS)) * inv_n)
    return seq_loss, bce_loss


# ------------------------- reference (pure JAX) ------------------------------ #

def _rmm_ref(x, mask):
    return jnp.sum(x * mask) / (jnp.sum(mask) + EPS)


def sequence_loss_ref(flow_preds, flow_gt, vis, valids, gamma=0.8):
    total = 0.0
    for j in range(len(flow_gt)):
        B, S, N, D = flow_gt[j].shape
        n_pred = len(flow_preds[j])
        fl = 0.0
        for i in range(n_pred):
            w = gamma ** (n_pred - i - 1)
            il = jnp.mean(jnp.abs(flow_preds[j][i] - flow_gt[j]), axis=3)
            fl = fl + w * _rmm_ref(il, valids[j])
        total = total + (fl / n_pred) / float(N)
    return total


def balanced_ce_loss_ref(pred, gt, valid):
    total = 0.0
    for j in range(len(gt)):
        B, S, N = gt[j].shape
        pos = (gt[j] > 0.95).astype(jnp.float32)
        neg = (gt[j] < 0.05).astype(jnp.float32)
        label = pos * 2.0 - 1.0
        a = -label * pred[j]
        b = jnp.maximum(a, 0.0)
        loss = b + jnp.log(jnp.exp(-b) + jnp.exp(a - b))
        total = total + (_rmm_ref(loss, pos * valid[j]) + _rmm_ref(loss, neg * valid[j])) / float(N)
    return total


# ---------------------------- network stub + wrapper -------------------------------- #

class CoTrackerStubNet:
    """TODO(synk): the real `net` (CoTracker) is an external black-box module with no
    parameter shapes given; replaced by a deterministic stub producing outputs with the
    correct structure (windowed predictions, wind_inds, sort_inds). Its window bookkeeping
    stays host-side because it is part of the stub, not the translated module."""

    def __init__(self, S, n_iters, key):
        self.S = S
        self.n_iters = n_iters
        self.key = key

    def __call__(self, rgbs, queries, is_train=True):
        B, T, C, H, W = rgbs.shape
        _, N, _ = queries.shape
        S = self.S
        first_inds = np.asarray(queries[0, :, 0]).astype(np.int64)        # (N,)
        sort_inds = np.argsort(first_inds, kind="stable")
        sorted_firsts = first_inds[sort_inds]
        stride = S // 2
        num_windows = (T - S) // stride + 1
        wind_inds = [int(max(1, np.sum(sorted_firsts < i * stride + S)))
                     for i in range(num_windows)]

        key = self.key
        vis_predictions, coord_predictions = [], []
        for i, nw in enumerate(wind_inds):
            key, k1, k2 = jax.random.split(key, 3)
            vis_predictions.append(jax.random.normal(k1, (B, S, nw), jnp.float32) * 2.0)
            base = (jax.random.normal(k2, (B, S, nw, 2), jnp.float32) * 3.0
                    + queries[:, None, sort_inds[:nw], 1:])
            iters = []
            for it in range(self.n_iters):
                key, k3 = jax.random.split(key)
                iters.append(base + jax.random.normal(k3, (B, S, nw, 2), jnp.float32)
                             * float(self.n_iters - it))
            coord_predictions.append(iters)
        key, k4, k5 = jax.random.split(key, 3)
        predictions = jax.random.normal(k4, (B, T, N, 2), jnp.float32)
        visibility = jax.random.normal(k5, (B, T, N), jnp.float32)
        train_data = (vis_predictions, coord_predictions, wind_inds, jnp.asarray(sort_inds))
        return predictions, None, visibility, train_data


class NetworkWrapper:
    def __init__(self, net, S, debug_asserts=False):
        self.net = net
        self.S = S                      # cfg.network.S
        self.debug_asserts = debug_asserts

    def forward(self, batch, key):
        rgbs = batch["video"]
        trajs_g = batch["trajectory"]
        vis_g = batch["visibility"]
        valids = batch["valid"]
        B, T, C, H, W = rgbs.shape
        assert C == 3
        B, T, N, D = trajs_g.shape

        first_positive_inds = jnp.argmax(vis_g, axis=1)                    # (B, N)
        N_rand = N // 4
        # Device-side replacement for the per-track torch.nonzero + randint loop:
        # argmax of iid uniforms restricted to visible frames is uniform over that set.
        # (Like the reference, the random indices are drawn from batch element 0.)
        u = jax.random.uniform(key, (T, N), jnp.float32)
        scores = jnp.where(vis_g[0] > 0, u, -1.0)
        rand_vis_inds = jnp.argmax(scores, axis=0).astype(first_positive_inds.dtype)
        rand_vis_inds = jnp.broadcast_to(rand_vis_inds[None, :], (B, N))
        first_positive_inds = jnp.concatenate(
            [rand_vis_inds[:, :N_rand], first_positive_inds[:, N_rand:]], axis=1)

        if self.debug_asserts:  # kept off the hot path: this forces a device->host sync
            picked = vis_g[jnp.arange(B)[:, None], first_positive_inds, jnp.arange(N)[None, :]]
            assert np.allclose(np.asarray(picked), 1.0)

        b_idx = jnp.arange(B)[:, None]
        n_idx = jnp.arange(N)[None, :]
        xys = trajs_g[b_idx, first_positive_inds, n_idx]                   # (B, N, 2)
        queries = jnp.concatenate(
            [first_positive_inds[:, :, None].astype(trajs_g.dtype), xys], axis=2)

        output = self.net(rgbs, queries, is_train=True)
        predictions, _, visibility, train_data = output
        vis_predictions, coord_predictions, wind_inds, sort_inds = train_data

        trajs_g = trajs_g[:, :, sort_inds]
        vis_g = vis_g[:, :, sort_inds]
        valids = valids[:, :, sort_inds]

        S = self.S
        vis_gts, traj_gts, valids_gts = [], [], []
        for i, wind_idx in enumerate(wind_inds):
            ind = i * (S // 2)
            vis_gts.append(vis_g[:, ind:ind + S, :wind_idx])
            traj_gts.append(trajs_g[:, ind:ind + S, :wind_idx])
            valids_gts.append(valids[:, ind:ind + S, :wind_idx])

        scalar_stats = {}
        seq_loss, bce_raw = fused_cotracker_losses(
            coord_predictions, vis_predictions, traj_gts, vis_gts, valids_gts, 0.8)
        vis_loss = bce_raw * 10.0
        loss = seq_loss + vis_loss
        scalar_stats["seq_loss"] = seq_loss
        scalar_stats["vis_loss"] = vis_loss
        scalar_stats["loss"] = loss
        image_stats = {}
        return output, loss, scalar_stats, image_stats


# ---------------------------------- main ------------------------------------- #

if __name__ == "__main__":
    key = jax.random.PRNGKey(0)
    B, T, C, H, W = 1, 16, 3, 16, 16
    N, D = 8, 2
    S, n_iters = 8, 3     # cfg.network.S = 8, 3 refinement iterations per window

    k_vid, k_traj, k_vis, k_valid, k_first, k_net, k_query = jax.random.split(key, 7)
    video = jax.random.normal(k_vid, (B, T, C, H, W), jnp.float32)
    trajectory = jax.random.uniform(k_traj, (B, T, N, D), jnp.float32, 0.0, float(W))
    vis = (jax.random.uniform(k_vis, (B, T, N)) > 0.5).astype(jnp.float32)
    first_frames = jax.random.randint(k_first, (N,), 0, T // 2)
    vis = vis.at[0, first_frames, jnp.arange(N)].set(1.0)   # every track visible somewhere
    valid = (jax.random.uniform(k_valid, (B, T, N)) > 0.1).astype(jnp.float32)
    batch = {"video": video, "trajectory": trajectory, "visibility": vis, "valid": valid}

    net = CoTrackerStubNet(S=S, n_iters=n_iters, key=k_net)
    wrapper = NetworkWrapper(net, S=S)
    output, loss, scalar_stats, image_stats = wrapper.forward(batch, k_query)
    loss = jax.block_until_ready(loss)

    # ---- reference check (pure JAX) ----
    predictions, _, visibility, train_data = output
    vis_predictions, coord_predictions, wind_inds, sort_inds = train_data
    tg = trajectory[:, :, sort_inds]
    vg = vis[:, :, sort_inds]
    vd = valid[:, :, sort_inds]
    traj_gts, vis_gts, val_gts = [], [], []
    for i, wi in enumerate(wind_inds):
        ind = i * (S // 2)
        traj_gts.append(tg[:, ind:ind + S, :wi])
        vis_gts.append(vg[:, ind:ind + S, :wi])
        val_gts.append(vd[:, ind:ind + S, :wi])
    ref = (sequence_loss_ref(coord_predictions, traj_gts, vis_gts, val_gts, 0.8)
           + balanced_ce_loss_ref(vis_predictions, vis_gts, val_gts) * 10.0)
    np.testing.assert_allclose(float(loss), float(ref), rtol=1e-4, atol=1e-5)
    print("KERNEL_OK")
</pallas_src>

<mosaic_0001>
module attributes {stable_mosaic.version = 11 : i64} {
  func.func @kernel(%arg0: i32, %arg1: memref<3x16x128xf32, #tpu.memory_space<vmem>>, %arg2: memref<16x128xf32, #tpu.memory_space<vmem>>, %arg3: memref<16x128xf32, #tpu.memory_space<vmem>>, %arg4: memref<8x128xf32, #tpu.memory_space<vmem>>, %arg5: memref<8x128xf32, #tpu.memory_space<vmem>>, %arg6: memref<8x128xf32, #tpu.memory_space<vmem>>, %arg7: memref<1x8x128xf32, #tpu.memory_space<vmem>>) attributes {dimension_semantics = [#tpu.dimension_semantics<parallel>], iteration_bounds = array<i64: 3>, scalar_prefetch = 0 : i64, scratch_operands = 0 : i64, tpu.core_type = #tpu.core_type<tc>, window_params = [{transform_indices = @transform_0, window_bounds = array<i64: 3, 16, 128>}, {transform_indices = @transform_1, window_bounds = array<i64: 16, 128>}, {transform_indices = @transform_2, window_bounds = array<i64: 16, 128>}, {transform_indices = @transform_3, window_bounds = array<i64: 8, 128>}, {transform_indices = @transform_4, window_bounds = array<i64: 8, 128>}, {transform_indices = @transform_5, window_bounds = array<i64: 8, 128>}, {transform_indices = @transform_6, window_bounds = array<i64: 1, 8, 128>}]} {
    %c0 = arith.constant 0 : index
    %c0_0 = arith.constant 0 : index
    %0 = vector.load %arg2[%c0, %c0_0] : memref<16x128xf32, #tpu.memory_space<vmem>>, vector<16x128xf32>
    %c0_1 = arith.constant 0 : index
    %c0_2 = arith.constant 0 : index
    %1 = vector.load %arg3[%c0_1, %c0_2] : memref<16x128xf32, #tpu.memory_space<vmem>>, vector<16x128xf32>
    %c0_3 = arith.constant 0 : index
    %c0_4 = arith.constant 0 : index
    %c0_5 = arith.constant 0 : index
    %2 = vector.load %arg1[%c0_3, %c0_4, %c0_5] : memref<3x16x128xf32, #tpu.memory_space<vmem>>, vector<1x16x128xf32>
    %3 = vector.shape_cast %2 : vector<1x16x128xf32> to vector<16x128xf32>
    %4 = arith.subf %3, %0 : vector<16x128xf32>
    %5 = math.absf %4 : vector<16x128xf32>
    %cst = arith.constant 0.106666669 : f32
    %6 = vector.broadcast %cst : f32 to vector<16x128xf32>
    %7 = arith.mulf %6, %5 : vector<16x128xf32>
    %c1 = arith.constant 1 : index
    %c0_6 = arith.constant 0 : index
    %c0_7 = arith.constant 0 : index
    %8 = vector.load %arg1[%c1, %c0_6, %c0_7] : memref<3x16x128xf32, #tpu.memory_space<vmem>>, vector<1x16x128xf32>
    %9 = vector.shape_cast %8 : vector<1x16x128xf32> to vector<16x128xf32>
    %10 = arith.subf %9, %0 : vector<16x128xf32>
    %11 = math.absf %10 : vector<16x128xf32>
    %cst_8 = arith.constant 0.13333334 : f32
    %12 = vector.broadcast %cst_8 : f32 to vector<16x128xf32>
    %13 = arith.mulf %12, %11 : vector<16x128xf32>
    %14 = arith.addf %7, %13 : vector<16x128xf32>
    %c2 = arith.constant 2 : index
    %c0_9 = arith.constant 0 : index
    %c0_10 = arith.constant 0 : index
    %15 = vector.load %arg1[%c2, %c0_9, %c0_10] : memref<3x16x128xf32, #tpu.memory_space<vmem>>, vector<1x16x128xf32>
    %16 = vector.shape_cast %15 : vector<1x16x128xf32> to vector<16x128xf32>
    %17 = arith.subf %16, %0 : vector<16x128xf32>
    %18 = math.absf %17 : vector<16x128xf32>
    %cst_11 = arith.constant 0.166666672 : f32
    %19 = vector.broadcast %cst_11 : f32 to vector<16x128xf32>
    %20 = arith.mulf %19, %18 : vector<16x128xf32>
    %21 = arith.addf %14, %20 : vector<16x128xf32>
    %22 = arith.mulf %21, %1 : vector<16x128xf32>
    %23 = vector.shape_cast %22 : vector<16x128xf32> to vector<1x16x128xf32>
    %cst_12 = arith.constant dense<0.000000e+00> : vector<1xf32>
    %24 = vector.multi_reduction <add>, %23, %cst_12 [1, 2] : vector<1x16x128xf32> to vector<1xf32>
    %25 = vector.shape_cast %24 : vector<1xf32> to vector<1x1x1xf32>
    %26 = vector.extract %25[0, 0, 0] : f32 from vector<1x1x1xf32>
    %c0_13 = arith.constant 0 : index
    %c0_14 = arith.constant 0 : index
    %27 = vector.load %arg4[%c0_13, %c0_14] : memref<8x128xf32, #tpu.memory_space<vmem>>, vector<8x128xf32>
    %c0_15 = arith.constant 0 : index
    %c0_16 = arith.constant 0 : index
    %28 = vector.load %arg5[%c0_15, %c0_16] : memref<8x128xf32, #tpu.memory_space<vmem>>, vector<8x128xf32>
    %c0_17 = arith.constant 0 : index
    %c0_18 = arith.constant 0 : index
    %29 = vector.load %arg6[%c0_17, %c0_18] : memref<8x128xf32, #tpu.memory_space<vmem>>, vector<8x128xf32>
    %30 = vector.shape_cast %29 : vector<8x128xf32> to vector<1x8x128xf32>
    %cst_19 = arith.constant dense<0.000000e+00> : vector<1xf32>
    %31 = vector.multi_reduction <add>, %30, %cst_19 [1, 2] : vector<1x8x128xf32> to vector<1xf32>
    %32 = vector.shape_cast %31 : vector<1xf32> to vector<1x1x1xf32>
    %33 = vector.extract %32[0, 0, 0] : f32 from vector<1x1x1xf32>
    %cst_20 = arith.constant 0.949999988 : f32
    %34 = vector.broadcast %cst_20 : f32 to vector<8x128xf32>
    %35 = arith.cmpf ogt, %28, %34 : vector<8x128xf32>
    %36 = arith.extui %35 : vector<8x128xi1> to vector<8x128xi32>
    %37 = arith.sitofp %36 : vector<8x128xi32> to vector<8x128xf32>
    %cst_21 = arith.constant 5.000000e-02 : f32
    %38 = vector.broadcast %cst_21 : f32 to vector<8x128xf32>
    %39 = arith.cmpf olt, %28, %38 : vector<8x128xf32>
    %40 = arith.extui %39 : vector<8x128xi1> to vector<8x128xi32>
    %41 = arith.sitofp %40 : vector<8x128xi32> to vector<8x128xf32>
    %cst_22 = arith.constant 2.000000e+00 : f32
    %42 = vector.broadcast %cst_22 : f32 to vector<8x128xf32>
    %43 = arith.mulf %37, %42 : vector<8x128xf32>
    %cst_23 = arith.constant 1.000000e+00 : f32
    %44 = vector.broadcast %cst_23 : f32 to vector<8x128xf32>
    %45 = arith.subf %43, %44 : vector<8x128xf32>
    %cst_24 = arith.constant 0.000000e+00 : f32
    %46 = vector.broadcast %cst_24 : f32 to vector<8x128xf32>
    %47 = arith.subf %46, %45 : vector<8x128xf32>
    %48 = arith.mulf %47, %27 : vector<8x128xf32>
    %cst_25 = arith.constant 0.000000e+00 : f32
    %49 = vector.broadcast %cst_25 : f32 to vector<8x128xf32>
    %50 = arith.maximumf %48, %49 : vector<8x128xf32>
    %51 = math.absf %48 : vector<8x128xf32>
    %cst_26 = arith.constant 0.000000e+00 : f32
    %52 = vector.broadcast %cst_26 : f32 to vector<8x128xf32>
    %53 = arith.subf %52, %51 : vector<8x128xf32>
    %54 = math.exp %53 : vector<8x128xf32>
    %cst_27 = arith.constant 1.000000e+00 : f32
    %55 = vector.broadcast %cst_27 : f32 to vector<8x128xf32>
    %56 = arith.addf %55, %54 : vector<8x128xf32>
    %57 = math.log %56 : vector<8x128xf32>
    %58 = arith.addf %50, %57 : vector<8x128xf32>
    %59 = arith.mulf %37, %29 : vector<8x128xf32>
    %60 = arith.mulf %41, %29 : vector<8x128xf32>
    %61 = arith.mulf %58, %59 : vector<8x128xf32>
    %62 = vector.shape_cast %61 : vector<8x128xf32> to vector<1x8x128xf32>
    %cst_28 = arith.constant dense<0.000000e+00> : vector<1xf32>
    %63 = vector.multi_reduction <add>, %62, %cst_28 [1, 2] : vector<1x8x128xf32> to vector<1xf32>
    %64 = vector.shape_cast %63 : vector<1xf32> to vector<1x1x1xf32>
    %65 = vector.extract %64[0, 0, 0] : f32 from vector<1x1x1xf32>
    %66 = vector.shape_cast %59 : vector<8x128xf32> to vector<1x8x128xf32>
    %cst_29 = arith.constant dense<0.000000e+00> : vector<1xf32>
    %67 = vector.multi_reduction <add>, %66, %cst_29 [1, 2] : vector<1x8x128xf32> to vector<1xf32>
    %68 = vector.shape_cast %67 : vector<1xf32> to vector<1x1x1xf32>
    %69 = vector.extract %68[0, 0, 0] : f32 from vector<1x1x1xf32>
    %70 = arith.mulf %58, %60 : vector<8x128xf32>
    %71 = vector.shape_cast %70 : vector<8x128xf32> to vector<1x8x128xf32>
    %cst_30 = arith.constant dense<0.000000e+00> : vector<1xf32>
    %72 = vector.multi_reduction <add>, %71, %cst_30 [1, 2] : vector<1x8x128xf32> to vector<1xf32>
    %73 = vector.shape_cast %72 : vector<1xf32> to vector<1x1x1xf32>
    %74 = vector.extract %73[0, 0, 0] : f32 from vector<1x1x1xf32>
    %75 = vector.shape_cast %60 : vector<8x128xf32> to vector<1x8x128xf32>
    %cst_31 = arith.constant dense<0.000000e+00> : vector<1xf32>
    %76 = vector.multi_reduction <add>, %75, %cst_31 [1, 2] : vector<1x8x128xf32> to vector<1xf32>
    %77 = vector.shape_cast %76 : vector<1xf32> to vector<1x1x1xf32>
    %78 = vector.extract %77[0, 0, 0] : f32 from vector<1x1x1xf32>
    %79 = tpu.iota {dimensions = array<i32: 1>} : vector<8x128xi32>
    %c0_i32 = arith.constant 0 : i32
    %80 = vector.broadcast %c0_i32 : i32 to vector<8x128xi32>
    %81 = arith.cmpi eq, %79, %80 : vector<8x128xi32>
    %cst_32 = arith.constant 0.000000e+00 : f32
    %82 = vector.broadcast %26 : f32 to vector<8x128xf32>
    %83 = vector.broadcast %cst_32 : f32 to vector<8x128xf32>
    %84 = arith.select %81, %82, %83 : vector<8x128xi1>, vector<8x128xf32>
    %c1_i32 = arith.constant 1 : i32
    %85 = vector.broadcast %c1_i32 : i32 to vector<8x128xi32>
    %86 = arith.cmpi eq, %79, %85 : vector<8x128xi32>
    %cst_33 = arith.constant 0.000000e+00 : f32
    %87 = vector.broadcast %33 : f32 to vector<8x128xf32>
    %88 = vector.broadcast %cst_33 : f32 to vector<8x128xf32>
    %89 = arith.select %86, %87, %88 : vector<8x128xi1>, vector<8x128xf32>
    %90 = arith.addf %84, %89 : vector<8x128xf32>
    %c2_i32 = arith.constant 2 : i32
    %91 = vector.broadcast %c2_i32 : i32 to vector<8x128xi32>
    %92 = arith.cmpi eq, %79, %91 : vector<8x128xi32>
    %cst_34 = arith.constant 0.000000e+00 : f32
    %93 = vector.broadcast %65 : f32 to vector<8x128xf32>
    %94 = vector.broadcast %cst_34 : f32 to vector<8x128xf32>
    %95 = arith.select %92, %93, %94 : vector<8x128xi1>, vector<8x128xf32>
    %96 = arith.addf %90, %95 : vector<8x128xf32>
    %c3_i32 = arith.constant 3 : i32
    %97 = vector.broadcast %c3_i32 : i32 to vector<8x128xi32>
    %98 = arith.cmpi eq, %79, %97 : vector<8x128xi32>
    %cst_35 = arith.constant 0.000000e+00 : f32
    %99 = vector.broadcast %69 : f32 to vector<8x128xf32>
    %100 = vector.broadcast %cst_35 : f32 to vector<8x128xf32>
    %101 = arith.select %98, %99, %100 : vector<8x128xi1>, vector<8x128xf32>
    %102 = arith.addf %96, %101 : vector<8x128xf32>
    %c4_i32 = arith.constant 4 : i32
    %103 = vector.broadcast %c4_i32 : i32 to vector<8x128xi32>
    %104 = arith.cmpi eq, %79, %103 : vector<8x128xi32>
    %cst_36 = arith.constant 0.000000e+00 : f32
    %105 = vector.broadcast %74 : f32 to vector<8x128xf32>
    %106 = vector.broadcast %cst_36 : f32 to vector<8x128xf32>
    %107 = arith.select %104, %105, %106 : vector<8x128xi1>, vector<8x128xf32>
    %108 = arith.addf %102, %107 : vector<8x128xf32>
    %c5_i32 = arith.constant 5 : i32
    %109 = vector.broadcast %c5_i32 : i32 to vector<8x128xi32>
    %110 = arith.cmpi eq, %79, %109 : vector<8x128xi32>
    %cst_37 = arith.constant 0.000000e+00 : f32
    %111 = vector.broadcast %78 : f32 to vector<8x128xf32>
    %112 = vector.broadcast %cst_37 : f32 to vector<8x128xf32>
    %113 = arith.select %110, %111, %112 : vector<8x128xi1>, vector<8x128xf32>
    %114 = arith.addf %108, %113 : vector<8x128xf32>
    %c0_38 = arith.constant 0 : index
    %c0_39 = arith.constant 0 : index
    %c0_40 = arith.constant 0 : index
    %115 = vector.load %arg7[%c0_38, %c0_39, %c0_40] : memref<1x8x128xf32, #tpu.memory_space<vmem>>, vector<1x8x128xf32>
    %116 = vector.shape_cast %115 : vector<1x8x128xf32> to vector<8x128xf32>
    %117 = vector.shape_cast %114 : vector<8x128xf32> to vector<1x8x128xf32>
    tpu.vector_store %arg7[%c0_38, %c0_39, %c0_40], %117 {strides = array<i32>} : memref<1x8x128xf32, #tpu.memory_space<vmem>>, vector<1x8x128xf32>,
    return
  }
  func.func @transform_0(%arg0: i32) -> (i32, i32, i32) {
    %c0_i32 = arith.constant 0 : i32
    %c0_i32_0 = arith.constant 0 : i32
    %c0_i32_1 = arith.constant 0 : i32
    return %c0_i32, %arg0, %c0_i32_0 : i32, i32, i32
  }
  func.func @transform_1(%arg0: i32) -> (i32, i32) {
    %c0_i32 = arith.constant 0 : i32
    %c0_i32_0 = arith.constant 0 : i32
    return %arg0, %c0_i32 : i32, i32
  }
  func.func @transform_2(%arg0: i32) -> (i32, i32) {
    %c0_i32 = arith.constant 0 : i32
    %c0_i32_0 = arith.constant 0 : i32
    return %arg0, %c0_i32 : i32, i32
  }
  func.func @transform_3(%arg0: i32) -> (i32, i32) {
    %c0_i32 = arith.constant 0 : i32
    %c0_i32_0 = arith.constant 0 : i32
    return %arg0, %c0_i32 : i32, i32
  }
  func.func @transform_4(%arg0: i32) -> (i32, i32) {
    %c0_i32 = arith.constant 0 : i32
    %c0_i32_0 = arith.constant 0 : i32
    return %arg0, %c0_i32 : i32, i32
  }
  func.func @transform_5(%arg0: i32) -> (i32, i32) {
    %c0_i32 = arith.constant 0 : i32
    %c0_i32_0 = arith.constant 0 : i32
    return %arg0, %c0_i32 : i32, i32
  }
  func.func @transform_6(%arg0: i32) -> (i32, i32, i32) {
    %c0_i32 = arith.constant 0 : i32
    %c0_i32_0 = arith.constant 0 : i32
    %c0_i32_1 = arith.constant 0 : i32
    return %arg0, %c0_i32, %c0_i32_0 : i32, i32, i32
  }
}

</mosaic_0001>

<bundles_post_ra>
// kernel: tpu_custom_call.1
= control target key start
LH: loop header
LB: loop body
LE: loop exit
PB: predicated region body
PF: predicated region fallthrough
CT: control target
= control target key end

     0   :  { %s1562_s0 = inlined_call_operand.hbm [shape: f32[3,48,128], index: 0, kind: input, shape index: {}]   ;;  %s1563_s1 = inlined_call_operand.hbm [shape: f32[48,128], index: 1, kind: input, shape index: {}]   ;;  %s1564_s2 = inlined_call_operand.hbm [shape: f32[48,128], index: 2, kind: input, shape index: {}]   ;;  %s1565_s3 = inlined_call_operand.hbm [shape: f32[24,128], index: 3, kind: input, shape index: {}]   ;;  %s1566_s4 = inlined_call_operand.hbm [shape: f32[24,128], index: 4, kind: input, shape index: {}]   ;;  %s1567_s5 = inlined_call_operand.hbm [shape: f32[24,128], index: 5, kind: input, shape index: {}]   ;;  %s1568_s6 = inlined_call_operand.hbm [shape: f32[3,8,128], index: 6, kind: output, shape index: {}]  }
   0x1   :  { %1577 = sst [smem:[#allocation25_spill]] %s1562_s0 }
   0x2   :  { %1578 = sst [smem:[#allocation26_spill]] %s1563_s1 }
   0x3   :  { %11 = vsyncpa [#allocation3], 0 }
   0x4   :  { %13 = vsyncpa [#allocation3 + $0x1], 0 }
   0x5   :  { %14 = vsyncpa [#allocation6], 0 }
   0x6   :  { %16 = vsyncpa [#allocation6 + $0x1], 0 }
   0x7   :  { %17 = vsyncpa [#allocation9], 0 }
   0x8   :  { %19 = vsyncpa [#allocation9 + $0x1], 0 }
   0x9   :  { %20 = vsyncpa [#allocation12], 0 }
   0xa   :  { %22 = vsyncpa [#allocation12 + $0x1], 0 }
   0xb   :  { %23 = vsyncpa [#allocation4], 0 }
   0xc   :  { %25 = vsyncpa [#allocation4 + $0x1], 0  ;;  %s1214_s21 = smov 0   ;;  %s1216_s22 = smov 0  }
   0xd   :  { %s1218_s23 = smov 0   ;;  %s1220_s24 = smov 0  }
   0xe LB: > { %1579 = sst [smem:[#allocation22_spill]] %s1158_s23  ;;  %s1235_s25 = sadd.s32 4294967295, %s1162_s24   ;;  %s1162_s24 = sphi %s1220_s24, %s1594_s24   ;;  %s1158_s23 = sphi %s1218_s23, %s1596_s23   ;;  %s1154_s22 = sphi %s1216_s22, %s1598_s22   ;;  %s1150_s21 = sphi %s1214_s21, %s1597_s21  }
   0xf   : > { %s819_s26 = sadd.s32 4294967294, %s1162_s24   ;;  %s1239_s27 = sadd.s32 1, %s1162_s24  }
  0x10   : > { %1580 = sst [smem:[#allocation23_spill]] %s1239_s27  ;;  %s38_s28 = sadd.s32 1, %s1158_s23 }
  0x11   : > { %s35_s29 = ssub.s32 %s1162_s24, %s1239_s27  ;;  %p45_p0 = scmp.ne.s32.totalorder %s1158_s23, %s1154_s22 }
  0x12   : > { %p36_p1 = scmp.eq.s32.totalorder %s35_s29, 0  ;;  %p46_p2 = scmp.eq.s32.totalorder %s1162_s24, 0 }
  0x13   : > { %p51_p3 = scmp.ne.s32.totalorder %s1154_s22, %s1150_s21  ;;  %p52_p4 = scmp.eq.s32.totalorder %s1235_s25, 0 }
  0x14   : > { %s1251_s30 = scalar_select %p36_p1, %s1158_s23, %s38_s28  }
  0x15   : > { %p1253_p5 = por %p46_p2, %p45_p0  ;;  %p1257_p6 = por %p52_p4, %p51_p3 }
  0x16   : > { %1581 = sst [smem:[#allocation24_spill]] %s1251_s30  ;;  %p205_p7 = scmp.eq.s32.totalorder %s1235_s25, 2 }
  0x17   : > { %s1583_s8 = scalar_select %p1257_p6, 1, 0 }
  0x18   : > { %p211_p8 = scmp.eq.s32.totalorder %s819_s26, 2  ;;  %p1262_p9 = por %p205_p7, %p45_p0 }
  0x19   : > { %p821_p11 = scmp.ge.s32.totalorder %s1162_s24, 3 }
  0x1a   : > { %s1584_s9 = scalar_select %p1262_p9, 1, 0 }
  0x1b   : > { %p1266_p10 = por %p211_p8, %p51_p3  ;;  %227 = sbr.rel (%p821_p11) target bundleno = 174 (0xae), region = 16 }
  0x1d   : > { %s1585_s10 = scalar_select %p1266_p10, 1, 0 }
  0x22   : > { %s1272_s11 = sand.u32 1, %s1158_s23   ;;  %s1276_s13 = sshll.u32 %s1162_s24, 8 }
  0x23   : > { %s859_s12 = smul.u32 48, %s1272_s11  ;;  %s1164_s14 = smov 768  }
  0x24   : > { %874 = sst [smem:[#allocation15]] (%p1253_p5), %s1164_s14  ;;  %s1165_s28 = smov 256  }
  0x25   : > { %s873_s15 = scalar_select %p1253_p5, [#allocation0], [#allocation16] }
  0x26   : > { %s1586_s0 = sld [smem:[#allocation25_spill]]  ;;  %s235_s20 = scalar_lea.vmem [#allocation2], %s859_s12 }
  0x27   : > { %s246_s19 = sld [smem:[%s873_s15]]   ;;  %s254_s26 = sshll.u32 %s235_s20, 4  ;;  %s255_s26 = int_to_ptr.vmem [resolvable:$true] %s254_s26 }
  0x28   : > { %875 = sst [smem:[#allocation15 + $0x1]] (%p1253_p5), %s1165_s28  ;;  %s1166_s29 = smov 2  }
  0x29   : > { %876 = sst [smem:[#allocation15 + $0x2]] (%p1253_p5), %s1166_s29  ;;  %s1167_s30 = smov 128  }
  0x2a   : > { %877 = sst [smem:[#allocation15 + $0x3]] (%p1253_p5), %s1167_s30  ;;  %s1168_s14 = smov 8  }
  0x2b   : > { %878 = sst [smem:[#allocation15 + $0x4]] (%p1253_p5), %s1167_s30  ;;  %s232_s12 = scalar_lea.sflag [#allocation3], %s1272_s11 }
  0x2c   : > { %s241_s18 = scalar_lea.hbm %s1586_s0, %s1276_s13  ;;  %879 = sst [smem:[#allocation15 + $0x5]] (%p1253_p5), %s1168_s14 }
  0x2d   : > { %s824_s16 = sshll.u32 %s246_s19, 26  ;;  %s1169_s17 = smov [#allocation14]  }
  0x2e   : > { %s825_s15 = sadd.s32 134217728, %s824_s16  ;;  %s1570_s20 = sand.u32 1, %s1162_s24  }
  0x2f   : > { %880 = dma.general (%p1253_p5), %s241_s18, 768, %s255_s26, %s232_s12, %s1169_s17, [#allocation15], %s825_s15, 0  }
  0x30   : > { %s826_s28 = sshll.u32 %s1272_s11, 4  ;;  %s1587_s1 = sld [smem:[#allocation26_spill]] }
  0x31   : > { %s281_s19 = scalar_lea.vmem [#allocation5], %s826_s28  ;;  %s1313_s26 = scalar_lea.sflag [#allocation6], %s1570_s20 }
  0x32   : > { %s288_s18 = sshll.u32 %s281_s19, 4  ;;  %s1309_s18 = int_to_ptr.vmem [resolvable:$true] %s288_s18 }
  0x36   : > { %s1305_s30 = scalar_lea.hbm %s1587_s1, %s1276_s13  ;;  %s948_s15 = scalar_lea.hbm %s1587_s1, 768 }
  0x37   : > { %s944_s14 = scalar_lea.hbm %s1305_s30, 256  ;;  %p949_p1 = scmp.lt.u32.totalorder %s1305_s30, %s1587_s1 }
  0x38   : > { %p945_p12 = scmp.ne.s32.totalorder %s1305_s30, %s944_s14  ;;  %p950_p2 = scmp.lt.u32.totalorder %s948_s15, %s944_s14 }
  0x39   : > { %p952_p4 = scmp.lt.u32.totalorder %s944_s14, %s1305_s30 }
  0x3a   : > { %p946_p13 = pnand %p945_p12, %p1253_p5  ;;  %p951_p3 = por %p950_p2, %p949_p1 }
  0x3c   : > { %p947_p0 = pneg %p946_p13  ;;  %p953_p7 = por %p952_p4, %p951_p3 }
  0x3e   : > { %p954_p8 = pnand %p953_p7, %p947_p0 }
  0x40   : > { %957 = shalt.err (!%p954_p8)
}
  0x41   : > { %s958_s29 = scalar_lea.vmem %s1309_s18, 256  ;;  %s1170_s19 = smov [#allocation5]  }
  0x42   : > { %p959_p11 = scmp.ne.s32.totalorder %s1309_s18, %s958_s29  ;;  %s962_s0 = sshll.u32 %s1170_s19, 4  ;;  %s963_s0 = int_to_ptr.vmem [resolvable:$false] %s962_s0 }
  0x43   : > { %s964_s16 = scalar_lea.vmem %s963_s0, 512  ;;  %p965_p10 = scmp.lt.s32.totalorder %s1309_s18, %s963_s0 }
  0x44   : > { %p960_p12 = pnand %p959_p11, %p1253_p5  ;;  %p966_p9 = scmp.lt.s32.totalorder %s964_s16, %s958_s29 }
  0x46   : > { %p961_p13 = pneg %p960_p12  ;;  %p967_p1 = por %p966_p9, %p965_p10 }
  0x48   : > { %p968_p2 = pnand %p967_p1, %p961_p13 }
  0x4a   : > { %971 = shalt.err (!%p968_p2)
}
  0x4b   : > { %s1571_s14 = smov 128   ;;  %s1572_s15 = smov 8  }
  0x4c   : > { %881 = dma.hbm_to_vmem [thread:$0]  (%p1253_p5), %s1305_s30, 256, %s1309_s18, %s1313_s26, %s1571_s14, %s1571_s14, %s1572_s15  }
  0x4d   : > { %s302_s12 = scalar_lea.vmem [#allocation7], %s826_s28  ;;  %s1343_s29 = sshll.u32 %s1272_s11, 3 }
  0x4e   : > { %s309_s17 = sshll.u32 %s302_s12, 4  ;;  %s1346_s19 = sshll.u32 %s1162_s24, 7  ;;  %s1363_s17 = int_to_ptr.vmem [resolvable:$true] %s309_s17 }
  0x4f   : > { %s1352_s20 = scalar_lea.hbm %s1565_s3, %s1346_s19  ;;  %s323_s1 = scalar_lea.vmem [#allocation8], %s1343_s29 }
  0x50   : > { %s330_s30 = sshll.u32 %s323_s1, 4  ;;  %s1359_s12 = scalar_lea.hbm %s1564_s2, %s1276_s13  ;;  %s1361_s30 = int_to_ptr.vmem [resolvable:$true] %s330_s30 }
  0x51   : > { %s1588_s14 = sand.u32 1, %s1162_s24   ;;  %s972_s0 = scalar_lea.hbm %s1352_s20, 128 }
  0x52   : > { %s1367_s15 = scalar_lea.sflag [#allocation9], %s1588_s14  ;;  %p973_p9 = scmp.ne.s32.totalorder %s1352_s20, %s972_s0 }
  0x53   : > { %s976_s1 = scalar_lea.hbm %s1565_s3, 384  ;;  %p977_p3 = scmp.lt.u32.totalorder %s1352_s20, %s1565_s3 }
  0x54   : > { %p974_p10 = pnand %p973_p9, %p1253_p5  ;;  %p978_p4 = scmp.lt.u32.totalorder %s976_s1, %s972_s0 }
  0x55   : > { %p980_p8 = scmp.lt.u32.totalorder %s972_s0, %s1352_s20 }
  0x56   : > { %p975_p0 = pneg %p974_p10  ;;  %p979_p7 = por %p978_p4, %p977_p3 }
  0x58   : > { %p981_p11 = por %p980_p8, %p979_p7 }
  0x5a   : > { %p982_p12 = pnand %p981_p11, %p975_p0 }
  0x5c   : > { %985 = shalt.err (!%p982_p12)
}
  0x5d   : > { %s986_s13 = scalar_lea.vmem %s1361_s30, 128  ;;  %s1173_s23 = smov [#allocation8]  }
  0x5e   : > { %p987_p13 = scmp.ne.s32.totalorder %s1361_s30, %s986_s13  ;;  %s990_s14 = sshll.u32 %s1173_s23, 4  ;;  %s991_s14 = int_to_ptr.vmem [resolvable:$false] %s990_s14 }
  0x5f   : > { %s992_s27 = scalar_lea.vmem %s991_s14, 256  ;;  %p993_p9 = scmp.lt.s32.totalorder %s1361_s30, %s991_s14 }
  0x60   : > { %p988_p1 = pnand %p987_p13, %p1253_p5  ;;  %p994_p10 = scmp.lt.s32.totalorder %s992_s27, %s986_s13 }
  0x62   : > { %p989_p2 = pneg %p988_p1  ;;  %p995_p3 = por %p994_p10, %p993_p9 }
  0x64   : > { %p996_p4 = pnand %p995_p3, %p989_p2 }
  0x66   : > { %999 = shalt.err (!%p996_p4)
}
  0x67   : > { %883 = dma.hbm_to_vmem [thread:$0]  (%p1253_p5), %s1352_s20, 128, %s1361_s30, %s1367_s15  }
  0x68   : > { %s1000_s28 = scalar_lea.hbm %s1359_s12, 256  ;;  %s1004_s1 = scalar_lea.hbm %s1564_s2, 768 }
  0x69   : > { %p1001_p0 = scmp.ne.s32.totalorder %s1359_s12, %s1000_s28  ;;  %p1005_p11 = scmp.lt.u32.totalorder %s1359_s12, %s1564_s2 }
  0x6a   : > { %p1006_p12 = scmp.lt.u32.totalorder %s1004_s1, %s1000_s28  ;;  %p1008_p1 = scmp.lt.u32.totalorder %s1000_s28, %s1359_s12 }
  0x6b   : > { %p1002_p7 = pnand %p1001_p0, %p1253_p5 }
  0x6c   : > { %p1007_p13 = por %p1006_p12, %p1005_p11 }
  0x6d   : > { %p1003_p8 = pneg %p1002_p7 }
  0x6e   : > { %p1009_p2 = por %p1008_p1, %p1007_p13 }
  0x70   : > { %p1010_p9 = pnand %p1009_p2, %p1003_p8 }
  0x72   : > { %1013 = shalt.err (!%p1010_p9)
}
  0x73   : > { %s1014_s20 = scalar_lea.vmem %s1363_s17, 256  ;;  %s1174_s30 = smov [#allocation7]  }
  0x74   : > { %p1015_p10 = scmp.ne.s32.totalorder %s1363_s17, %s1014_s20  ;;  %s1018_s23 = sshll.u32 %s1174_s30, 4  ;;  %s1019_s23 = int_to_ptr.vmem [resolvable:$false] %s1018_s23 }
  0x75   : > { %s1020_s14 = scalar_lea.vmem %s1019_s23, 512  ;;  %p1021_p0 = scmp.lt.s32.totalorder %s1363_s17, %s1019_s23 }
  0x76   : > { %p1016_p3 = pnand %p1015_p10, %p1253_p5  ;;  %p1022_p7 = scmp.lt.s32.totalorder %s1020_s14, %s1014_s20 }
  0x78   : > { %p1017_p4 = pneg %p1016_p3  ;;  %p1023_p11 = por %p1022_p7, %p1021_p0 }
  0x7a   : > { %p1024_p12 = pnand %p1023_p11, %p1017_p4 }
  0x7c   : > { %1027 = shalt.err (!%p1024_p12)
}
  0x7d   : > { %s1589_s27 = smov 8   ;;  %s1590_s28 = smov 128  }
  0x7e   : > { %882 = dma.hbm_to_vmem [thread:$0]  (%p1253_p5), %s1359_s12, 256, %s1363_s17, %s1313_s26, %s1590_s28, %s1590_s28, %s1589_s27  }
  0x7f   : > { %s1420_s1 = scalar_lea.hbm %s1566_s4, %s1346_s19  ;;  %s341_s18 = scalar_lea.vmem [#allocation10], %s1343_s29 }
  0x80   : > { %s348_s13 = sshll.u32 %s341_s18, 4  ;;  %s1028_s20 = scalar_lea.hbm %s1420_s1, 128  ;;  %s349_s13 = int_to_ptr.vmem [resolvable:$true] %s348_s13 }
  0x81   : > { %p1029_p8 = scmp.ne.s32.totalorder %s1420_s1, %s1028_s20  ;;  %s1032_s26 = scalar_lea.hbm %s1566_s4, 384 }
  0x82   : > { %p1033_p2 = scmp.lt.u32.totalorder %s1420_s1, %s1566_s4  ;;  %p1034_p9 = scmp.lt.u32.totalorder %s1032_s26, %s1028_s20 }
  0x83   : > { %p1030_p13 = pnand %p1029_p8, %p1253_p5  ;;  %p1036_p3 = scmp.lt.u32.totalorder %s1028_s20, %s1420_s1 }
  0x84   : > { %p1035_p10 = por %p1034_p9, %p1033_p2 }
  0x85   : > { %p1031_p1 = pneg %p1030_p13 }
  0x86   : > { %p1037_p4 = por %p1036_p3, %p1035_p10 }
  0x88   : > { %p1038_p0 = pnand %p1037_p4, %p1031_p1 }
  0x8a   : > { %1041 = shalt.err (!%p1038_p0)
}
  0x8b   : > { %s1042_s14 = scalar_lea.vmem %s349_s13, 128  ;;  %s1175_s27 = smov [#allocation10]  }
  0x8c   : > { %p1043_p7 = scmp.ne.s32.totalorder %s349_s13, %s1042_s14  ;;  %s1046_s28 = sshll.u32 %s1175_s27, 4  ;;  %s1047_s28 = int_to_ptr.vmem [resolvable:$false] %s1046_s28 }
  0x8d   : > { %s1048_s0 = scalar_lea.vmem %s1047_s28, 256  ;;  %p1049_p8 = scmp.lt.s32.totalorder %s349_s13, %s1047_s28 }
  0x8e   : > { %p1044_p11 = pnand %p1043_p7, %p1253_p5  ;;  %p1050_p13 = scmp.lt.s32.totalorder %s1048_s0, %s1042_s14 }
  0x90   : > { %p1045_p12 = pneg %p1044_p11  ;;  %p1051_p6 = por %p1050_p13, %p1049_p8 }
  0x92   : > { %p1052_p2 = pnand %p1051_p6, %p1045_p12 }
  0x94   : > { %1055 = shalt.err (!%p1052_p2)
}
  0x95   : > { %884 = dma.hbm_to_vmem [thread:$0]  (%p1253_p5), %s1420_s1, 128, %s349_s13, %s1367_s15  }
  0x96   : > { %s1445_s20 = scalar_lea.hbm %s1567_s5, %s1346_s19  ;;  %s359_s30 = scalar_lea.vmem [#allocation11], %s1343_s29 }
  0x97   : > { %s366_s23 = sshll.u32 %s359_s30, 4  ;;  %s356_s26 = scalar_lea.sflag [#allocation12], %s1272_s11  ;;  %s367_s23 = int_to_ptr.vmem [resolvable:$true] %s366_s23 }
  0x98   : > { %s1056_s17 = scalar_lea.hbm %s1445_s20, 128  ;;  %s1060_s1 = scalar_lea.hbm %s1567_s5, 384 }
  0x99   : > { %p1057_p6 = scmp.ne.s32.totalorder %s1445_s20, %s1056_s17  ;;  %p1061_p10 = scmp.lt.u32.totalorder %s1445_s20, %s1567_s5 }
  0x9a   : > { %p1062_p3 = scmp.lt.u32.totalorder %s1060_s1, %s1056_s17  ;;  %p1064_p0 = scmp.lt.u32.totalorder %s1056_s17, %s1445_s20 }
  0x9b   : > { %p1058_p1 = pnand %p1057_p6, %p1253_p5 }
  0x9c   : > { %p1063_p4 = por %p1062_p3, %p1061_p10 }
  0x9d   : > { %p1059_p9 = pneg %p1058_p1 }
  0x9e   : > { %p1065_p7 = por %p1064_p0, %p1063_p4 }
  0xa0   : > { %p1066_p11 = pnand %p1065_p7, %p1059_p9 }
  0xa2   : > { %1069 = shalt.err (!%p1066_p11)
}
  0xa3   : > { %s1070_s11 = scalar_lea.vmem %s367_s23, 128  ;;  %s1176_s29 = smov [#allocation11]  }
  0xa4   : > { %p1071_p12 = scmp.ne.s32.totalorder %s367_s23, %s1070_s11  ;;  %s1074_s14 = sshll.u32 %s1176_s29, 4  ;;  %s1075_s14 = int_to_ptr.vmem [resolvable:$false] %s1074_s14 }
  0xa5   : > { %s1076_s27 = scalar_lea.vmem %s1075_s14, 256  ;;  %p1077_p2 = scmp.lt.s32.totalorder %s367_s23, %s1075_s14 }
  0xa6   : > { %p1072_p8 = pnand %p1071_p12, %p1253_p5  ;;  %p1078_p6 = scmp.lt.s32.totalorder %s1076_s27, %s1070_s11 }
  0xa8   : > { %p1073_p13 = pneg %p1072_p8  ;;  %p1079_p1 = por %p1078_p6, %p1077_p2 }
  0xaa   : > { %p1080_p3 = pnand %p1079_p1, %p1073_p13 }
  0xac   : > { %1083 = shalt.err (!%p1080_p3)
}
  0xad   : > { %885 = dma.hbm_to_vmem [thread:$0]  (%p1253_p5), %s1445_s20, 128, %s367_s23, %s356_s26  }
  0xae PF: > { %p838_p9 = scmp.ge.s32.totalorder %s1162_s24, 1  ;;  %p371_p10 = scmp.lt.s32.totalorder %s1162_s24, 4 }
  0xb0   : > { %p372_p4 = pnand %p838_p9, %p371_p10 }
  0xb1   : > { %s1469_s28 = sand.u32 (!%p372_p4), 1, %s1154_s22   ;;  %p1591_p0 = scmp.ne.s32.totalorder (!%p372_p4), %s1583_s8, 0 }
  0xb2   : > { %375 = sbr.rel (%p372_p4) target bundleno = 479 (0x1df), region = 44  ;;  %s378_s16 = scalar_lea.sflag (!%p372_p4), [#allocation3], %s1469_s28 }
  0xb3   : > { %s860_s0 = smul.u32 (!%p372_p4), 48, %s1469_s28 }
  0xb5   : > { %s1473_s18 = scalar_lea.vmem (!%p372_p4), [#allocation2], %s860_s0 }
  0xb9   : > { %1129 = dma.done.wait (%p1591_p0), %s378_s16, 768  }
  0xba   : > { %1131 = vsyncadd (%p1591_p0), %s378_s16, 4294966528  ;;  %s386_s7 = sand.u32 1, %s1235_s25   ;;  %s839_s20 = sshll.u32 %s1469_s28, 4 }
  0xbb   : > { %s387_s30 = scalar_lea.sflag [#allocation6], %s386_s7  ;;  %s390_s23 = scalar_lea.vmem [#allocation5], %s839_s20 }
  0xbc   : > { %1133 = dma.done.wait (%p1591_p0), %s387_s30, 512  }
  0xbd   : > { %1135 = vsyncadd (%p1591_p0), %s387_s30, 4294966784  ;;  %s1486_s26 = sshll.u32 %s1469_s28, 3  ;;  %s1488_s17 = scalar_lea.vmem [#allocation7], %s839_s20 }
  0xbe   : > { %s405_s12 = scalar_lea.sflag [#allocation9], %s386_s7  ;;  %s408_s15 = scalar_lea.vmem [#allocation8], %s1486_s26 }
  0xbf   : > { %1137 = dma.done.wait (%p1591_p0), %s405_s12, 256  }
  0xc0   : > { %1139 = vsyncadd (%p1591_p0), %s405_s12, 4294967040  ;;  %s417_s1 = scalar_lea.vmem [#allocation10], %s1486_s26  ;;  %s423_s13 = scalar_lea.sflag [#allocation12], %s1469_s28 }
  0xc1   : > { %s426_s19 = scalar_lea.vmem [#allocation11], %s1486_s26 }
  0xc2   : > { %1141 = dma.done.wait (%p1591_p0), %s423_s13, 128  }
  0xc3   : > { %1143 = vsyncadd (%p1591_p0), %s423_s13, 4294967168  ;;  %v483_v0 = vld [vmem:[%s390_s23] sm:$0xff]  ;;  %v484_v1 = vld [vmem:[%s390_s23 + $0x8] sm:$0xff]  ;;  %v1177_v29 = vmov 0.0   ;;  %s853_s0 = sshll.u32 %s1235_s25, 7  ;;  %s627_s25 = scalar_lea.sflag [#allocation4], %s1469_s28 }
  0xc4   : > { %v487_v2 = vld [vmem:[%s1473_s18] sm:$0xff]  ;;  %v488_v3 = vld [vmem:[%s1473_s18 + $0x8] sm:$0xff]  ;;  %v845_v6 = vld [vmem:[%s1473_s18 + $0x10] sm:$0xff]  ;;  %s1519_s23 = scalar_lea.hbm %s1568_s6, %s853_s0  ;;  %p1592_p7 = scmp.ne.s32.totalorder %s1584_s9, 0 }
  0xc5   : > { %v489_v4 = vsub.f32 %v487_v2, %v483_v0  ;;  %v490_v5 = vsub.f32 %v488_v3, %v484_v1  ;;  %v846_v7 = vld [vmem:[%s1473_s18 + $0x18] sm:$0xff]  ;;  %v847_v8 = vld [vmem:[%s1473_s18 + $0x20] sm:$0xff]  ;;  %v498_v9 = vsub.f32 %v845_v6, %v483_v0  ;;  %v848_v11 = vld [vmem:[%s1473_s18 + $0x28] sm:$0xff]  ;;  %s479_s18 = scalar_lea.vmem [#allocation13], %s1486_s26  ;;  %s1178_s26 = smov [#allocation13]  }
  0xc6   : > { %v499_v10 = vsub.f32 %v846_v7, %v484_v1  ;;  %v509_v12 = vsub.f32 %v847_v8, %v483_v0  ;;  %v510_v15 = vsub.f32 %v848_v11, %v484_v1  ;;  %v530_v16 = vld [vmem:[%s417_s1] sm:$0xff]  ;;  %v485_v31 = vld [vmem:[%s1488_s17] sm:$0xff]  ;;  %s640_s7 = sshll.u32 %s479_s18, 4  ;;  %s1088_s12 = sshll.u32 %s1178_s26, 4  ;;  %s1521_s7 = int_to_ptr.vmem [resolvable:$true] %s640_s7  ;;  %s1089_s12 = int_to_ptr.vmem [resolvable:$false] %s1088_s12 }
  0xc7   : > { %v491_v13 = vand.u32 2147483647, %v489_v4  ;;  %v492_v14 = vand.u32 2147483647, %v490_v5  ;;  %v500_v17 = vand.u32 2147483647, %v498_v9  ;;  %p1091_p8 = scmp.lt.s32.totalorder %s1521_s7, %s1089_s12 }
  0xc8   : > { %v501_v18 = vand.u32 2147483647, %v499_v10  ;;  %v511_v19 = vand.u32 2147483647, %v509_v12  ;;  %v512_v22 = vand.u32 2147483647, %v510_v15 }
  0xc9   : > { %v493_v20 = vmul.f32 0.10666667, %v491_v13  ;;  %v494_v21 = vmul.f32 0.10666667, %v492_v14  ;;  %v502_v23 = vmul.f32 0.13333334, %v500_v17 }
  0xca   : > { %v503_v24 = vmul.f32 0.13333334, %v501_v18  ;;  %v513_v25 = vmul.f32 0.16666667, %v511_v19  ;;  %v514_v26 = vmul.f32 0.16666667, %v512_v22 }
  0xcb   : > { %vm541_vm0 = vcmp.gt.f32.partialorder %v530_v16, 0.95  ;;  %v504_v27 = vadd.f32 %v502_v23, %v493_v20  ;;  %v486_v32 = vld [vmem:[%s1488_s17 + $0x8] sm:$0xff]  ;;  %v529_v39 = vld [vmem:[%s408_s15] sm:$0xff]  ;;  %vm544_vm1 = vcmp.lt.f32.partialorder %v530_v16, 0.05 }
  0xcc   : > { %v505_v28 = vadd.f32 %v503_v24, %v494_v21  ;;  %v849_v30 = vsel %vm541_vm0, 1.0, %v1177_v29  ;;  %v531_v43 = vld [vmem:[%s426_s19] sm:$0xff]  ;;  %v850_v49 = vsel %vm544_vm1, 1.0, %v1177_v29  ;;  %s1084_s17 = scalar_lea.vmem %s1521_s7, 128  ;;  %s1090_s15 = scalar_lea.vmem %s1089_s12, 256 }
  0xcd   : > { %v547_v33 = vmul.f32 2.0, %v849_v30  ;;  %v515_v34 = vadd.f32 %v513_v25, %v504_v27  ;;  %v560_v53 = vmul.f32 %v849_v30, %v531_v43  ;;  %v561_v54 = vmul.f32 %v850_v49, %v531_v43  ;;  %p1085_p5 = scmp.ne.s32.totalorder %s1521_s7, %s1084_s17  ;;  %p1092_p13 = scmp.lt.s32.totalorder %s1090_s15, %s1084_s17 }
  0xce   : > { %v516_v35 = vadd.f32 %v514_v26, %v505_v28 }
  0xcf   : > { %v851_v36 = vadd.f32 -1.0, %v547_v33  ;;  %v517_v37 = vmul.f32 %v515_v34, %v485_v31  ;;  %p1086_p11 = pnand %p1085_p5, %p1592_p7  ;;  %p1093_p2 = por %p1092_p13, %p1091_p8 }
  0xd0   : > { %v518_v38 = vmul.f32 %v516_v35, %v486_v32 }
  0xd1   : > { %v549_v40 = vsub.f32 0.0, %v851_v36  ;;  %v600_v36 = vlaneseq  ;;  %p1087_p12 = pneg %p1086_p11 }
  0xd2   : > { %v519_v41 = vadd.f32 %v518_v38, %v517_v37 }
  0xd3   : > { %v550_v42 = vmul.f32 %v549_v40, %v529_v39  ;;  %v601_v37 = vand.u32 127, %v600_v36  ;;  %p1094_p6 = pnand %p1093_p2, %p1087_p12 }
  0xd4   : > { %520 = vadd.xlane.f32.xlu0 %v519_v41 }
  0xd5   : > { %v552_v44 = vand.u32 2147483647, %v550_v42  ;;  %v551_v50 = vmax.f32 %v550_v42, 0.0  ;;  %vm602_vm2 = vcmp.eq.s32.totalorder %v601_v37, 0  ;;  %vm605_vm3 = vcmp.eq.s32.totalorder %v601_v37, 1 }
  0xd6   : > { %vm609_vm4 = vcmp.eq.s32.totalorder %v601_v37, 2  ;;  %vm613_vm5 = vcmp.eq.s32.totalorder %v601_v37, 3  ;;  %vm617_vm6 = vcmp.eq.s32.totalorder %v601_v37, 4  ;;  %vm621_vm7 = vcmp.eq.s32.totalorder %v601_v37, 5 }
  0xd7   : > { %v553_v45 = vsub.f32 0.0, %v552_v44 }
  0xd8   : > { %532 = vadd.xlane.f32.xlu0 %v531_v43 }
  0xd9   : > { %v554_v46 = vmul.f32 1.442695, %v553_v45 }
  0xdb   : > { %940 = vpow2.f32 %v554_v46 }
  0xe5   : > { %v941_v47 = vpop.eup %940 }
  0xe6   : > { %v556_v48 = vadd.f32 1.0, %v941_v47 }
  0xe8   : > { %942 = vlog2.f32 %v556_v48 }
  0xf2   : > { %v943_v51 = vpop.eup %942 }
  0xf3   : > { %v558_v52 = vmul.f32 0.6931472, %v943_v51 }
  0xf5   : > { %v559_v55 = vadd.f32 %v558_v52, %v551_v50 }
  0xf7   : > { %v562_v56 = vmul.f32 %v560_v53, %v559_v55  ;;  %v581_v57 = vmul.f32 %v561_v54, %v559_v55 }
  0xf9   : > { %563 = vadd.xlane.f32.xlu1 %v562_v56  ;;  %582 = vadd.xlane.f32.xlu0 %v581_v57 }
  0xfd   : > { %572 = vadd.xlane.f32.xlu1 %v560_v53 }
 0x101   : > { %591 = vadd.xlane.f32.xlu1 %v561_v54 }
 0x161   : > { %v521_v58 = vpop.xlane.xlu0 %520 }
 0x162   : > { %v522_v59 = vrot.slane %v521_v58, 4 }
 0x164   : > { %v523_v60 = vadd.f32 %v522_v59, %v521_v58 }
 0x165   : > { %v533_v61 = vpop.xlane.xlu0 %532 }
 0x166   : > { %v524_v62 = vrot.slane %v523_v60, 2  ;;  %v534_v63 = vrot.slane %v533_v61, 4 }
 0x168   : > { %v535_v0 = vadd.f32 %v534_v63, %v533_v61  ;;  %v525_v1 = vadd.f32 %v524_v62, %v523_v60 }
 0x16a   : > { %v536_v2 = vrot.slane %v535_v0, 2  ;;  %v526_v3 = vrot.slane %v525_v1, 1 }
 0x16c   : > { %v527_v4 = vadd.f32 %v526_v3, %v525_v1  ;;  %v537_v5 = vadd.f32 %v536_v2, %v535_v0 }
 0x16e   : > { %861 = vpush %v527_v4  ;;  %v538_v6 = vrot.slane %v537_v5, 1 }
 0x170   : > { %v539_v7 = vadd.f32 %v538_v6, %v537_v5 }
 0x172   : > { %863 = vpush %v539_v7 }
 0x186   : > { %v564_v8 = vpop.xlane.xlu1 %563  ;;  %v583_v9 = vpop.xlane.xlu0 %582 }
 0x187   : > { %v565_v10 = vrot.slane %v564_v8, 4  ;;  %v584_v11 = vrot.slane %v583_v9, 4 }
 0x189   : > { %v566_v12 = vadd.f32 %v565_v10, %v564_v8  ;;  %v585_v13 = vadd.f32 %v584_v11, %v583_v9 }
 0x18a   : > { %v573_v14 = vpop.xlane.xlu1 %572 }
 0x18b   : > { %v567_v15 = vrot.slane %v566_v12, 2  ;;  %v586_v16 = vrot.slane %v585_v13, 2  ;;  %v574_v17 = vrot.slane %v573_v14, 4 }
 0x18d   : > { %v575_v18 = vadd.f32 %v574_v17, %v573_v14  ;;  %v568_v19 = vadd.f32 %v567_v15, %v566_v12  ;;  %v587_v20 = vadd.f32 %v586_v16, %v585_v13 }
 0x18e   : > { %v592_v21 = vpop.xlane.xlu1 %591 }
 0x18f   : > { %v576_v22 = vrot.slane %v575_v18, 2  ;;  %v593_v23 = vrot.slane %v592_v21, 4  ;;  %v569_v24 = vrot.slane %v568_v19, 1  ;;  %v588_v28 = vrot.slane %v587_v20, 1 }
 0x191   : > { %v594_v25 = vadd.f32 %v593_v23, %v592_v21  ;;  %v570_v26 = vadd.f32 %v569_v24, %v568_v19  ;;  %v577_v27 = vadd.f32 %v576_v22, %v575_v18  ;;  %v589_v33 = vadd.f32 %v588_v28, %v587_v20 }
 0x193   : > { %v595_v29 = vrot.slane %v594_v25, 2  ;;  %865 = vpush %v570_v26  ;;  %v578_v30 = vrot.slane %v577_v27, 1 }
 0x195   : > { %v596_v31 = vadd.f32 %v595_v29, %v594_v25  ;;  %v579_v32 = vadd.f32 %v578_v30, %v577_v27 }
 0x197   : > { %867 = vpush %v579_v32  ;;  %v597_v34 = vrot.slane %v596_v31, 1 }
 0x198   : > { %869 = vpush %v589_v33 }
 0x199   : > { %v598_v35 = vadd.f32 %v597_v34, %v596_v31 }
 0x19b   : > { %871 = vpush %v598_v35 }
 0x19f   : > { %s862_s8 = spop %861 }
 0x1a0   : > { %v603_v38 = vstv %s862_s8 }
 0x1a1   : > { %v604_v40 = vsel %vm602_vm2, %v603_v38, 0.0 }
 0x1a3   : > { %s864_s11 = spop %863 }
 0x1a4   : > { %v606_v39 = vstv %s864_s11 }
 0x1a5   : > { %v607_v41 = vsel %vm605_vm3, %v606_v39, 0.0 }
 0x1a6   : > { %v608_v44 = vadd.f32 %v607_v41, %v604_v40 }
 0x1c4   : > { %s866_s29 = spop %865 }
 0x1c5   : > { %v610_v42 = vstv %s866_s29 }
 0x1c6   : > { %v611_v43 = vsel %vm609_vm4, %v610_v42, 0.0 }
 0x1c7   : > { %v612_v45 = vadd.f32 %v611_v43, %v608_v44 }
 0x1c8   : > { %s868_s14 = spop %867 }
 0x1c9   : > { %v614_v46 = vstv %s868_s14  ;;  %s870_s27 = spop %869 }
 0x1ca   : > { %v615_v47 = vsel %vm613_vm5, %v614_v46, 0.0  ;;  %v618_v48 = vstv %s870_s27 }
 0x1cb   : > { %v616_v49 = vadd.f32 %v615_v47, %v612_v45  ;;  %v619_v50 = vsel %vm617_vm6, %v618_v48, 0.0 }
 0x1cc   : > { %s872_s16 = spop %871 }
 0x1cd   : > { %v620_v51 = vadd.f32 %v619_v50, %v616_v49  ;;  %v622_v52 = vstv %s872_s16 }
 0x1ce   : > { %v623_v53 = vsel %vm621_vm7, %v622_v52, 0.0 }
 0x1cf   : > { %v624_v54 = vadd.f32 %v623_v53, %v620_v51 }
 0x1d1   : > { %625 = vst [vmem:[%s479_s18] sm:$0xff] %v624_v54 }
 0x1d2   : > { %1097 = shalt.err (!%p1094_p6)
}
 0x1d3   : > { %s1098_s28 = scalar_lea.hbm %s1519_s23, 128  ;;  %s1102_s19 = scalar_lea.hbm %s1568_s6, 384 }
 0x1d4   : > { %p1099_p1 = scmp.ne.s32.totalorder %s1519_s23, %s1098_s28  ;;  %p1103_p10 = scmp.lt.u32.totalorder %s1519_s23, %s1568_s6 }
 0x1d5   : > { %p1104_p4 = scmp.lt.u32.totalorder %s1102_s19, %s1098_s28  ;;  %p1106_p5 = scmp.lt.u32.totalorder %s1098_s28, %s1519_s23 }
 0x1d6   : > { %p1100_p3 = pnand %p1099_p1, %p1592_p7 }
 0x1d7   : > { %p1105_p0 = por %p1104_p4, %p1103_p10 }
 0x1d8   : > { %p1101_p9 = pneg %p1100_p3 }
 0x1d9   : > { %p1107_p11 = por %p1106_p5, %p1105_p0 }
 0x1db   : > { %p1108_p12 = pnand %p1107_p11, %p1101_p9 }
 0x1dd   : > { %1111 = shalt.err (!%p1108_p12)
}
 0x1de   : > { %892 = dma.vmem_to_hbm [thread:$0]  (%p1592_p7), %s1521_s7, 128, %s1519_s23, %s627_s25  }
 0x1df PF: > { %p898_p8 = scmp.ge.s32.totalorder %s1162_s24, 2  ;;  %s652_s29 = sand.u32 1, %s1150_s21  }
 0x1e0   : > { %p1593_p13 = scmp.ne.s32.totalorder %s1585_s10, 0  ;;  %s653_s14 = scalar_lea.sflag [#allocation4], %s652_s29 }
 0x1e2   : > { %p895_p2 = pnand %p898_p8, %p1593_p13 }
 0x1e4   : > { %1145 = dma.done.wait (!%p895_p2), %s653_s14, 128  }
 0x1e5   : > { %1147 = vsyncadd (!%p895_p2), %s653_s14, 4294967168  ;;  %s1594_s24 = sld [smem:[#allocation23_spill]]  ;;  %s1595_s27 = sld [smem:[#allocation22_spill]] }
 0x1e6   : > { %s1596_s23 = sld [smem:[#allocation24_spill]]  ;;  %s1597_s21 = smov %s1154_s22 }
 0x1eb   : > { %p28_p6 = scmp.ge.s32.totalorder %s1594_s24, 5   ;;  %s1598_s22 = smov %s1595_s27 }
 0x1ed   :  { %30 = sbr.rel (!%p28_p6) target bundleno = 14 (0xe), region = 157 }
 0x1f4   :  { %658 = vsyncpa [#allocation3], 1 }
 0x1f5   :  { %660 = vsyncpa [#allocation3 + $0x1], 1 }
 0x1f6   :  { %661 = vsyncpa [#allocation6], 1 }
 0x1f7   :  { %663 = vsyncpa [#allocation6 + $0x1], 1 }
 0x1f8   :  { %664 = vsyncpa [#allocation9], 1 }
 0x1f9   :  { %666 = vsyncpa [#allocation9 + $0x1], 1 }
 0x1fa   :  { %667 = vsyncpa [#allocation12], 1 }
 0x1fb   :  { %669 = vsyncpa [#allocation12 + $0x1], 1 }
 0x1fc   :  { %670 = vsyncpa [#allocation4], 1 }
 0x1fd   :  { %672 = vsyncpa [#allocation4 + $0x1], 1 }

</bundles_post_ra>
